<compile_context>
chip_gen: v6e
topology: v6e:2x2x1
jax: 0.10.0
libtpu: 0.0.40
codegen_flags: <defaults>
</compile_context>

<pallas_src>
import functools
import math

import jax
import jax.numpy as jnp
from jax import lax
from jax.experimental import pallas as pl
from jax.experimental.pallas import tpu as pltpu


def _blended_attention_kernel(content_ref, style_ref, pos_ref, *rest,
                              compute_dtype, fuse_qk):
    if fuse_qk:
        (wqk_ref, bqk_ref,            # fused [query_content | key_content], q pre-scaled
         wvc_ref, bvc_ref,            # value_content
         wks_ref, bks_ref,            # key_style, pre-scaled by lambda_val
         wvs_ref, bvs_ref,            # value_style
         out_ref) = rest
    else:
        (wq_ref, bq_ref,              # query_content, pre-scaled by 1/sqrt(d)
         wkc_ref, bkc_ref,            # key_content
         wvc_ref, bvc_ref,            # value_content
         wks_ref, bks_ref,            # key_style, pre-scaled by lambda_val
         wvs_ref, bvs_ref,            # value_style
         out_ref) = rest

    Bt, Lc, Dc = content_ref.shape
    _, Ls, _ = style_ref.shape

    c3 = content_ref[...]                      # (Bt, Lc, Dc)
    s3 = style_ref[...]                        # (Bt, Ls, Dc)
    p3 = pos_ref[...]                          # (Bt, Lc, Dc)

    cp3 = c3 + p3                              # with_pos_embed(content, pos)
    sp3 = s3 + p3                              # with_pos_embed(style, pos)

    # Flatten (batch-tile, seq) into the sublane axis for the 2-D projection matmuls.
    cp2 = cp3.reshape(Bt * Lc, Dc)
    sp2 = sp3.reshape(Bt * Ls, Dc)
    c2 = c3.reshape(Bt * Lc, Dc)
    s2 = s3.reshape(Bt * Ls, Dc)

    def mm(a, w_ref):
        return jnp.dot(a.astype(compute_dtype), w_ref[...].astype(compute_dtype),
                       preferred_element_type=jnp.float32)

    if fuse_qk:
        # One (Bt*Lc, Dc) @ (Dc, 2*Dc) matmul; column slices are lane-tile aligned
        # because Dc % 128 == 0 on this path.
        qk2 = mm(cp2, wqk_ref) + bqk_ref[...]  # (Bt*Lc, 2*Dc)
        q2 = qk2[:, :Dc]                       # already scaled by 1/sqrt(d)
        kc2 = qk2[:, Dc:]
    else:
        q2 = mm(cp2, wq_ref) + bq_ref[...]     # already scaled by 1/sqrt(d)
        kc2 = mm(cp2, wkc_ref) + bkc_ref[...]
    vc2 = mm(c2, wvc_ref) + bvc_ref[...]
    ks2 = mm(sp2, wks_ref) + bks_ref[...]      # already scaled by lambda_val
    vs2 = mm(s2, wvs_ref) + bvs_ref[...]

    q = q2.reshape(Bt, Lc, Dc)
    kc = kc2.reshape(Bt, Lc, Dc)
    vc = vc2.reshape(Bt, Lc, Dc)
    ks = ks2.reshape(Bt, Ls, Dc)
    vs = vs2.reshape(Bt, Ls, Dc)

    # Scores: contract the minor (feature) dim of both operands -> transposed-RHS
    # MXU path (no explicit XLU transpose of the key blocks).
    dn_qk = (((2,), (2,)), ((0,), (0,)))
    s_style = lax.dot_general(q.astype(compute_dtype), ks.astype(compute_dtype),
                              dn_qk, preferred_element_type=jnp.float32)   # (Bt, Lc, Ls)
    s_cont = lax.dot_general(q.astype(compute_dtype), kc.astype(compute_dtype),
                             dn_qk, preferred_element_type=jnp.float32)    # (Bt, Lc, Lc)

    # Concat-free joint softmax over the [style | content] key axis (f32 math).
    m = jnp.maximum(jnp.max(s_style, axis=-1, keepdims=True),
                    jnp.max(s_cont, axis=-1, keepdims=True))
    e_s = jnp.exp(s_style - m)
    e_c = jnp.exp(s_cont - m)
    denom = (jnp.sum(e_s, axis=-1, keepdims=True)
             + jnp.sum(e_c, axis=-1, keepdims=True))
    inv = pl.reciprocal(denom, approx=True)    # EUP slot; applied in the epilogue

    # TODO(synk): nn.Dropout(p=0.1) on attention probs is train-time stochastic;
    # implemented as identity (eval-mode semantics).

    # attention output = (e_s @ vs + e_c @ vc) * inv   (normalization distributes).
    dn_pv = (((2,), (1,)), ((0,), (0,)))
    acc = lax.dot_general(e_s.astype(compute_dtype), vs.astype(compute_dtype),
                          dn_pv, preferred_element_type=jnp.float32)
    acc = acc + lax.dot_general(e_c.astype(compute_dtype), vc.astype(compute_dtype),
                                dn_pv, preferred_element_type=jnp.float32)

    out_ref[...] = (acc * inv).astype(out_ref.dtype)


def blended_attention_pallas(content, style, pos, params, *, lambda_val=0.5,
                             num_heads=1, compute_dtype=jnp.float32,
                             block_b=None, vmem_limit_bytes=None):
    assert num_heads == 1, "kernel specialized for the module default num_heads=1"
    B, Lc, Dc = content.shape
    Bs, Ls, Ds = style.shape
    assert B == Bs
    # Module adds `pos` (shape of content) to style -> shapes must match.
    assert (Ls, Ds) == (Lc, Dc), "style must match content/pos shape when pos is given"
    d = Dc // num_heads
    inv_sqrt_d = 1.0 / math.sqrt(d)

    (wq, bq, wkc, bkc, wvc, bvc, wks, bks, wvs, bvs) = params

    # Host-side param prep: fold 1/sqrt(d) into the query projection, lambda_val into
    # the style-key projection. Fuse [query | content-key] only when the column slice
    # after the fused matmul is lane-tile aligned (Dc % 128 == 0); otherwise the slice
    # would force an intra-tile lane relayout and two separate matmuls are cheaper.
    fuse_qk = (Dc % 128 == 0)

    wq_s = wq * inv_sqrt_d
    bq_s = bq * inv_sqrt_d
    wks_s = wks * lambda_val
    bks_r = (bks * lambda_val).reshape(1, -1)
    bvc_r = bvc.reshape(1, -1)
    bvs_r = bvs.reshape(1, -1)

    if fuse_qk:
        w_qk = jnp.concatenate([wq_s, wkc], axis=1)                       # (Dc, 2*Dc)
        b_qk = jnp.concatenate([bq_s, bkc], axis=0).reshape(1, -1)        # (1, 2*Dc)
        weight_args = [w_qk, b_qk, wvc, bvc_r, wks_s, bks_r, wvs, bvs_r]
        weight_shapes = [(Dc, 2 * Dc), (1, 2 * Dc), (Dc, Dc), (1, Dc),
                         (Dc, Dc), (1, Dc), (Dc, Dc), (1, Dc)]
    else:
        weight_args = [wq_s, bq_s.reshape(1, -1), wkc, bkc.reshape(1, -1),
                       wvc, bvc_r, wks_s, bks_r, wvs, bvs_r]
        weight_shapes = [(Dc, Dc), (1, Dc)] * 5

    if compute_dtype != jnp.float32:
        # Halve weight DMA/VMEM when feeding the MXU in bf16 (biases stay f32).
        weight_args = [a.astype(compute_dtype) if (i % 2 == 0) else a
                       for i, a in enumerate(weight_args)]

    # Pack several batch elements per grid step to amortize per-step overhead, bounded
    # by a rough per-step VMEM working-set estimate (inputs/outputs double-buffered).
    if block_b is None:
        def step_bytes(bb):
            seq = 4 * bb * Lc * Dc * 4                      # content, style, pos, out
            interm = bb * (5 * Lc * Dc + 4 * Lc * (Lc + Ls)) * 4
            return 2 * seq + interm
        block_b = 1
        for cand in (16, 8, 4, 2, 1):
            if B % cand == 0 and step_bytes(cand) < (24 << 20):
                block_b = cand
                break
    assert B % block_b == 0

    kernel = functools.partial(_blended_attention_kernel,
                               compute_dtype=compute_dtype, fuse_qk=fuse_qk)

    seq_spec = pl.BlockSpec((block_b, Lc, Dc), lambda i: (i, 0, 0))
    param_specs = [pl.BlockSpec(shape, lambda i: (0, 0)) for shape in weight_shapes]

    cp_kwargs = dict(dimension_semantics=("parallel",))
    if vmem_limit_bytes is not None:
        cp_kwargs["vmem_limit_bytes"] = vmem_limit_bytes

    # Advisory cost estimate for the XLA scheduler.
    proj_flops = 2 * B * Lc * Dc * Dc * 5
    attn_flops = 2 * 2 * B * Lc * (Lc + Ls) * Dc       # scores + prob@value
    transcendentals = B * Lc * (Lc + Ls)               # exps (softmax)
    bytes_accessed = (4 * B * Lc * Dc * 4
                      + sum(int(a.size) * a.dtype.itemsize for a in weight_args))
    cost = pl.CostEstimate(flops=int(proj_flops + attn_flops),
                           transcendentals=int(transcendentals),
                           bytes_accessed=int(bytes_accessed))

    return pl.pallas_call(
        kernel,
        out_shape=jax.ShapeDtypeStruct((B, Lc, Dc), content.dtype),
        grid_spec=pltpu.PrefetchScalarGridSpec(
            num_scalar_prefetch=0,
            grid=(B // block_b,),
            in_specs=[seq_spec, seq_spec, seq_spec] + param_specs,
            out_specs=pl.BlockSpec((block_b, Lc, Dc), lambda i: (i, 0, 0)),
        ),
        compiler_params=pltpu.CompilerParams(**cp_kwargs),
        cost_estimate=cost,
    )(content, style, pos, *weight_args)


def blended_attention_reference(content, style, pos, params, *, lambda_val=0.5):
    """Pure-JAX reference mirroring the PyTorch forward (num_heads=1, eval dropout)."""
    (wq, bq, wkc, bkc, wvc, bvc, wks, bks, wvs, bvs) = params
    d = content.shape[-1]
    cp = content + pos
    sp = style + pos
    qc = cp @ wq + bq
    kc = cp @ wkc + bkc
    vc = content @ wvc + bvc
    ks = sp @ wks + bks
    vs = style @ wvs + bvs
    style_scores = lambda_val * jnp.einsum("bqd,bkd->bqk", qc, ks) / math.sqrt(d)
    content_scores = jnp.einsum("bqd,bkd->bqk", qc, kc) / math.sqrt(d)
    combined = jnp.concatenate([style_scores, content_scores], axis=-1)
    probs = jax.nn.softmax(combined, axis=-1)
    values = jnp.concatenate([vs, vc], axis=1)
    return jnp.einsum("bqk,bkd->bqd", probs, values)


def init_params(key, content_dim, style_dim):
    ks = jax.random.split(key, 10)
    scale = 0.02

    def w(k, din, dout):
        return scale * jax.random.normal(k, (din, dout), jnp.float32)

    def b(k, dout):
        return scale * jax.random.normal(k, (dout,), jnp.float32)

    return (
        w(ks[0], content_dim, content_dim), b(ks[1], content_dim),   # query_content
        w(ks[2], content_dim, content_dim), b(ks[3], content_dim),   # key_content
        w(ks[4], content_dim, content_dim), b(ks[5], content_dim),   # value_content
        w(ks[6], style_dim, content_dim), b(ks[7], content_dim),     # key_style
        w(ks[8], style_dim, content_dim), b(ks[9], content_dim),     # value_style
    )


if __name__ == "__main__":
    key = jax.random.PRNGKey(0)

    # --- Config 1: small, non-lane-aligned D (unfused q/kc path). ---
    B, L, content_dim, style_dim = 2, 8, 32, 32  # pos is added to style -> dims match
    k_c, k_s, k_p, k_w, k2 = jax.random.split(key, 5)

    content = jax.random.normal(k_c, (B, L, content_dim), jnp.float32)
    style = jax.random.normal(k_s, (B, L, style_dim), jnp.float32)
    pos = jax.random.normal(k_p, (B, L, content_dim), jnp.float32)
    params = init_params(k_w, content_dim, style_dim)

    ref = blended_attention_reference(content, style, pos, params, lambda_val=0.5)

    # f32 MXU operands (exact-path, default).
    out = blended_attention_pallas(content, style, pos, params, lambda_val=0.5)
    out = jax.block_until_ready(out)
    assert out.shape == (B, L, content_dim)
    assert jnp.allclose(out, ref, atol=2e-4, rtol=2e-3), "f32 kernel mismatch vs reference"

    # bf16 MXU operands (v6e/v7x fast path), f32 accumulation + softmax.
    out_bf16 = blended_attention_pallas(content, style, pos, params, lambda_val=0.5,
                                        compute_dtype=jnp.bfloat16)
    out_bf16 = jax.block_until_ready(out_bf16)
    assert jnp.allclose(out_bf16, ref, atol=1e-2, rtol=1e-2), "bf16 kernel mismatch vs reference"

    # --- Config 2: lane-aligned D=128 (fused [q|kc] path). ---
    k_c2, k_s2, k_p2, k_w2 = jax.random.split(k2, 4)
    D2 = 128
    content2 = jax.random.normal(k_c2, (B, L, D2), jnp.float32)
    style2 = jax.random.normal(k_s2, (B, L, D2), jnp.float32)
    pos2 = jax.random.normal(k_p2, (B, L, D2), jnp.float32)
    params2 = init_params(k_w2, D2, D2)

    ref2 = blended_attention_reference(content2, style2, pos2, params2, lambda_val=0.5)
    out2 = blended_attention_pallas(content2, style2, pos2, params2, lambda_val=0.5)
    out2 = jax.block_until_ready(out2)
    assert out2.shape == (B, L, D2)
    assert jnp.allclose(out2, ref2, atol=2e-4, rtol=2e-3), "fused-path kernel mismatch vs reference"

    print("KERNEL_OK")
</pallas_src>

<mosaic_0001>
module attributes {stable_mosaic.version = 11 : i64} {
  func.func @_blended_attention_kernel(%arg0: i32, %arg1: memref<2x8x32xf32, #tpu.memory_space<vmem>>, %arg2: memref<2x8x32xf32, #tpu.memory_space<vmem>>, %arg3: memref<2x8x32xf32, #tpu.memory_space<vmem>>, %arg4: memref<32x32xf32, #tpu.memory_space<vmem>>, %arg5: memref<1x32xf32, #tpu.memory_space<vmem>>, %arg6: memref<32x32xf32, #tpu.memory_space<vmem>>, %arg7: memref<1x32xf32, #tpu.memory_space<vmem>>, %arg8: memref<32x32xf32, #tpu.memory_space<vmem>>, %arg9: memref<1x32xf32, #tpu.memory_space<vmem>>, %arg10: memref<32x32xf32, #tpu.memory_space<vmem>>, %arg11: memref<1x32xf32, #tpu.memory_space<vmem>>, %arg12: memref<32x32xf32, #tpu.memory_space<vmem>>, %arg13: memref<1x32xf32, #tpu.memory_space<vmem>>, %arg14: memref<2x8x32xf32, #tpu.memory_space<vmem>>) attributes {dimension_semantics = [#tpu.dimension_semantics<parallel>], iteration_bounds = array<i64: 1>, scalar_prefetch = 0 : i64, scratch_operands = 0 : i64, tpu.core_type = #tpu.core_type<tc>, window_params = [{transform_indices = @transform_0, window_bounds = array<i64: 2, 8, 32>}, {transform_indices = @transform_1, window_bounds = array<i64: 2, 8, 32>}, {transform_indices = @transform_2, window_bounds = array<i64: 2, 8, 32>}, {pipeline_mode = #tpu.pipeline_mode<synchronous>, transform_indices = @transform_3, window_bounds = array<i64: 32, 32>}, {pipeline_mode = #tpu.pipeline_mode<synchronous>, transform_indices = @transform_4, window_bounds = array<i64: 1, 32>}, {pipeline_mode = #tpu.pipeline_mode<synchronous>, transform_indices = @transform_5, window_bounds = array<i64: 32, 32>}, {pipeline_mode = #tpu.pipeline_mode<synchronous>, transform_indices = @transform_6, window_bounds = array<i64: 1, 32>}, {pipeline_mode = #tpu.pipeline_mode<synchronous>, transform_indices = @transform_7, window_bounds = array<i64: 32, 32>}, {pipeline_mode = #tpu.pipeline_mode<synchronous>, transform_indices = @transform_8, window_bounds = array<i64: 1, 32>}, {pipeline_mode = #tpu.pipeline_mode<synchronous>, transform_indices = @transform_9, window_bounds = array<i64: 32, 32>}, {pipeline_mode = #tpu.pipeline_mode<synchronous>, transform_indices = @transform_10, window_bounds = array<i64: 1, 32>}, {pipeline_mode = #tpu.pipeline_mode<synchronous>, transform_indices = @transform_11, window_bounds = array<i64: 32, 32>}, {pipeline_mode = #tpu.pipeline_mode<synchronous>, transform_indices = @transform_12, window_bounds = array<i64: 1, 32>}, {transform_indices = @transform_13, window_bounds = array<i64: 2, 8, 32>}]} {
    %c0 = arith.constant 0 : index
    %c0_0 = arith.constant 0 : index
    %c0_1 = arith.constant 0 : index
    %0 = vector.load %arg1[%c0, %c0_0, %c0_1] : memref<2x8x32xf32, #tpu.memory_space<vmem>>, vector<2x8x32xf32>
    %c0_2 = arith.constant 0 : index
    %c0_3 = arith.constant 0 : index
    %c0_4 = arith.constant 0 : index
    %1 = vector.load %arg2[%c0_2, %c0_3, %c0_4] : memref<2x8x32xf32, #tpu.memory_space<vmem>>, vector<2x8x32xf32>
    %c0_5 = arith.constant 0 : index
    %c0_6 = arith.constant 0 : index
    %c0_7 = arith.constant 0 : index
    %2 = vector.load %arg3[%c0_5, %c0_6, %c0_7] : memref<2x8x32xf32, #tpu.memory_space<vmem>>, vector<2x8x32xf32>
    %3 = arith.addf %0, %2 : vector<2x8x32xf32>
    %4 = arith.addf %1, %2 : vector<2x8x32xf32>
    %5 = vector.shape_cast %3 : vector<2x8x32xf32> to vector<16x32xf32>
    %6 = vector.shape_cast %4 : vector<2x8x32xf32> to vector<16x32xf32>
    %7 = vector.shape_cast %0 : vector<2x8x32xf32> to vector<16x32xf32>
    %8 = vector.shape_cast %1 : vector<2x8x32xf32> to vector<16x32xf32>
    %c0_8 = arith.constant 0 : index
    %c0_9 = arith.constant 0 : index
    %9 = vector.load %arg4[%c0_8, %c0_9] : memref<32x32xf32, #tpu.memory_space<vmem>>, vector<32x32xf32>
    %cst = arith.constant dense<0.000000e+00> : vector<16x32xf32>
    %10 = tpu.matmul %5, %9, %cst {dimension_numbers = #tpu.dot_dimension_numbers<[1], [0], [0], [1], [0, 0, 1, 1], [], []>} : vector<16x32xf32>, vector<32x32xf32>, vector<16x32xf32> -> vector<16x32xf32>
    %c0_10 = arith.constant 0 : index
    %c0_11 = arith.constant 0 : index
    %11 = vector.load %arg5[%c0_10, %c0_11] : memref<1x32xf32, #tpu.memory_space<vmem>>, vector<1x32xf32>
    %12 = vector.broadcast %11 : vector<1x32xf32> to vector<16x32xf32>
    %13 = arith.addf %10, %12 : vector<16x32xf32>
    %c0_12 = arith.constant 0 : index
    %c0_13 = arith.constant 0 : index
    %14 = vector.load %arg6[%c0_12, %c0_13] : memref<32x32xf32, #tpu.memory_space<vmem>>, vector<32x32xf32>
    %cst_14 = arith.constant dense<0.000000e+00> : vector<16x32xf32>
    %15 = tpu.matmul %5, %14, %cst_14 {dimension_numbers = #tpu.dot_dimension_numbers<[1], [0], [0], [1], [0, 0, 1, 1], [], []>} : vector<16x32xf32>, vector<32x32xf32>, vector<16x32xf32> -> vector<16x32xf32>
    %c0_15 = arith.constant 0 : index
    %c0_16 = arith.constant 0 : index
    %16 = vector.load %arg7[%c0_15, %c0_16] : memref<1x32xf32, #tpu.memory_space<vmem>>, vector<1x32xf32>
    %17 = vector.broadcast %16 : vector<1x32xf32> to vector<16x32xf32>
    %18 = arith.addf %15, %17 : vector<16x32xf32>
    %c0_17 = arith.constant 0 : index
    %c0_18 = arith.constant 0 : index
    %19 = vector.load %arg8[%c0_17, %c0_18] : memref<32x32xf32, #tpu.memory_space<vmem>>, vector<32x32xf32>
    %cst_19 = arith.constant dense<0.000000e+00> : vector<16x32xf32>
    %20 = tpu.matmul %7, %19, %cst_19 {dimension_numbers = #tpu.dot_dimension_numbers<[1], [0], [0], [1], [0, 0, 1, 1], [], []>} : vector<16x32xf32>, vector<32x32xf32>, vector<16x32xf32> -> vector<16x32xf32>
    %c0_20 = arith.constant 0 : index
    %c0_21 = arith.constant 0 : index
    %21 = vector.load %arg9[%c0_20, %c0_21] : memref<1x32xf32, #tpu.memory_space<vmem>>, vector<1x32xf32>
    %22 = vector.broadcast %21 : vector<1x32xf32> to vector<16x32xf32>
    %23 = arith.addf %20, %22 : vector<16x32xf32>
    %c0_22 = arith.constant 0 : index
    %c0_23 = arith.constant 0 : index
    %24 = vector.load %arg10[%c0_22, %c0_23] : memref<32x32xf32, #tpu.memory_space<vmem>>, vector<32x32xf32>
    %cst_24 = arith.constant dense<0.000000e+00> : vector<16x32xf32>
    %25 = tpu.matmul %6, %24, %cst_24 {dimension_numbers = #tpu.dot_dimension_numbers<[1], [0], [0], [1], [0, 0, 1, 1], [], []>} : vector<16x32xf32>, vector<32x32xf32>, vector<16x32xf32> -> vector<16x32xf32>
    %c0_25 = arith.constant 0 : index
    %c0_26 = arith.constant 0 : index
    %26 = vector.load %arg11[%c0_25, %c0_26] : memref<1x32xf32, #tpu.memory_space<vmem>>, vector<1x32xf32>
    %27 = vector.broadcast %26 : vector<1x32xf32> to vector<16x32xf32>
    %28 = arith.addf %25, %27 : vector<16x32xf32>
    %c0_27 = arith.constant 0 : index
    %c0_28 = arith.constant 0 : index
    %29 = vector.load %arg12[%c0_27, %c0_28] : memref<32x32xf32, #tpu.memory_space<vmem>>, vector<32x32xf32>
    %cst_29 = arith.constant dense<0.000000e+00> : vector<16x32xf32>
    %30 = tpu.matmul %8, %29, %cst_29 {dimension_numbers = #tpu.dot_dimension_numbers<[1], [0], [0], [1], [0, 0, 1, 1], [], []>} : vector<16x32xf32>, vector<32x32xf32>, vector<16x32xf32> -> vector<16x32xf32>
    %c0_30 = arith.constant 0 : index
    %c0_31 = arith.constant 0 : index
    %31 = vector.load %arg13[%c0_30, %c0_31] : memref<1x32xf32, #tpu.memory_space<vmem>>, vector<1x32xf32>
    %32 = vector.broadcast %31 : vector<1x32xf32> to vector<16x32xf32>
    %33 = arith.addf %30, %32 : vector<16x32xf32>
    %34 = vector.shape_cast %13 : vector<16x32xf32> to vector<2x8x32xf32>
    %35 = vector.shape_cast %18 : vector<16x32xf32> to vector<2x8x32xf32>
    %36 = vector.shape_cast %23 : vector<16x32xf32> to vector<2x8x32xf32>
    %37 = vector.shape_cast %28 : vector<16x32xf32> to vector<2x8x32xf32>
    %38 = vector.shape_cast %33 : vector<16x32xf32> to vector<2x8x32xf32>
    %cst_32 = arith.constant dense<0.000000e+00> : vector<2x8x8xf32>
    %39 = tpu.matmul %34, %37, %cst_32 {dimension_numbers = #tpu.dot_dimension_numbers<[2], [2], [1], [1], [0, 0, 0, 1, 1, 1], [0], [0]>} : vector<2x8x32xf32>, vector<2x8x32xf32>, vector<2x8x8xf32> -> vector<2x8x8xf32>
    %cst_33 = arith.constant dense<0.000000e+00> : vector<2x8x8xf32>
    %40 = tpu.matmul %34, %35, %cst_33 {dimension_numbers = #tpu.dot_dimension_numbers<[2], [2], [1], [1], [0, 0, 0, 1, 1, 1], [0], [0]>} : vector<2x8x32xf32>, vector<2x8x32xf32>, vector<2x8x8xf32> -> vector<2x8x8xf32>
    %cst_34 = arith.constant dense<0xFF800000> : vector<2x8xf32>
    %41 = vector.multi_reduction <maximumf>, %39, %cst_34 [2] : vector<2x8x8xf32> to vector<2x8xf32>
    %42 = vector.shape_cast %41 : vector<2x8xf32> to vector<2x8x1xf32>
    %cst_35 = arith.constant dense<0xFF800000> : vector<2x8xf32>
    %43 = vector.multi_reduction <maximumf>, %40, %cst_35 [2] : vector<2x8x8xf32> to vector<2x8xf32>
    %44 = vector.shape_cast %43 : vector<2x8xf32> to vector<2x8x1xf32>
    %45 = arith.maximumf %42, %44 : vector<2x8x1xf32>
    %46 = vector.broadcast %45 : vector<2x8x1xf32> to vector<2x8x8xf32>
    %47 = arith.subf %39, %46 : vector<2x8x8xf32>
    %48 = math.exp %47 : vector<2x8x8xf32>
    %49 = vector.broadcast %45 : vector<2x8x1xf32> to vector<2x8x8xf32>
    %50 = arith.subf %40, %49 : vector<2x8x8xf32>
    %51 = math.exp %50 : vector<2x8x8xf32>
    %cst_36 = arith.constant dense<0.000000e+00> : vector<2x8xf32>
    %52 = vector.multi_reduction <add>, %48, %cst_36 [2] : vector<2x8x8xf32> to vector<2x8xf32>
    %53 = vector.shape_cast %52 : vector<2x8xf32> to vector<2x8x1xf32>
    %cst_37 = arith.constant dense<0.000000e+00> : vector<2x8xf32>
    %54 = vector.multi_reduction <add>, %51, %cst_37 [2] : vector<2x8x8xf32> to vector<2x8xf32>
    %55 = vector.shape_cast %54 : vector<2x8xf32> to vector<2x8x1xf32>
    %56 = arith.addf %53, %55 : vector<2x8x1xf32>
    %57 = tpu.reciprocal %56 {approx = true} : vector<2x8x1xf32> -> vector<2x8x1xf32>
    %cst_38 = arith.constant dense<0.000000e+00> : vector<2x8x32xf32>
    %58 = tpu.matmul %48, %38, %cst_38 {dimension_numbers = #tpu.dot_dimension_numbers<[2], [1], [1], [2], [0, 0, 0, 1, 1, 2], [0], [0]>} : vector<2x8x8xf32>, vector<2x8x32xf32>, vector<2x8x32xf32> -> vector<2x8x32xf32>
    %cst_39 = arith.constant dense<0.000000e+00> : vector<2x8x32xf32>
    %59 = tpu.matmul %51, %36, %cst_39 {dimension_numbers = #tpu.dot_dimension_numbers<[2], [1], [1], [2], [0, 0, 0, 1, 1, 2], [0], [0]>} : vector<2x8x8xf32>, vector<2x8x32xf32>, vector<2x8x32xf32> -> vector<2x8x32xf32>
    %60 = arith.addf %58, %59 : vector<2x8x32xf32>
    %61 = vector.broadcast %57 : vector<2x8x1xf32> to vector<2x8x32xf32>
    %62 = arith.mulf %60, %61 : vector<2x8x32xf32>
    %c0_40 = arith.constant 0 : index
    %c0_41 = arith.constant 0 : index
    %c0_42 = arith.constant 0 : index
    %63 = vector.load %arg14[%c0_40, %c0_41, %c0_42] : memref<2x8x32xf32, #tpu.memory_space<vmem>>, vector<2x8x32xf32>
    tpu.vector_store %arg14[%c0_40, %c0_41, %c0_42], %62 {strides = array<i32>} : memref<2x8x32xf32, #tpu.memory_space<vmem>>, vector<2x8x32xf32>,
    return
  }
  func.func @transform_0(%arg0: i32) -> (i32, i32, i32) {
    %c0_i32 = arith.constant 0 : i32
    %c0_i32_0 = arith.constant 0 : i32
    %c0_i32_1 = arith.constant 0 : i32
    return %arg0, %c0_i32, %c0_i32_0 : i32, i32, i32
  }
  func.func @transform_1(%arg0: i32) -> (i32, i32, i32) {
    %c0_i32 = arith.constant 0 : i32
    %c0_i32_0 = arith.constant 0 : i32
    %c0_i32_1 = arith.constant 0 : i32
    return %arg0, %c0_i32, %c0_i32_0 : i32, i32, i32
  }
  func.func @transform_2(%arg0: i32) -> (i32, i32, i32) {
    %c0_i32 = arith.constant 0 : i32
    %c0_i32_0 = arith.constant 0 : i32
    %c0_i32_1 = arith.constant 0 : i32
    return %arg0, %c0_i32, %c0_i32_0 : i32, i32, i32
  }
  func.func @transform_3(%arg0: i32) -> (i32, i32) {
    %c0_i32 = arith.constant 0 : i32
    %c0_i32_0 = arith.constant 0 : i32
    %c0_i32_1 = arith.constant 0 : i32
    return %c0_i32, %c0_i32_0 : i32, i32
  }
  func.func @transform_4(%arg0: i32) -> (i32, i32) {
    %c0_i32 = arith.constant 0 : i32
    %c0_i32_0 = arith.constant 0 : i32
    %c0_i32_1 = arith.constant 0 : i32
    return %c0_i32, %c0_i32_0 : i32, i32
  }
  func.func @transform_5(%arg0: i32) -> (i32, i32) {
    %c0_i32 = arith.constant 0 : i32
    %c0_i32_0 = arith.constant 0 : i32
    %c0_i32_1 = arith.constant 0 : i32
    return %c0_i32, %c0_i32_0 : i32, i32
  }
  func.func @transform_6(%arg0: i32) -> (i32, i32) {
    %c0_i32 = arith.constant 0 : i32
    %c0_i32_0 = arith.constant 0 : i32
    %c0_i32_1 = arith.constant 0 : i32
    return %c0_i32, %c0_i32_0 : i32, i32
  }
  func.func @transform_7(%arg0: i32) -> (i32, i32) {
    %c0_i32 = arith.constant 0 : i32
    %c0_i32_0 = arith.constant 0 : i32
    %c0_i32_1 = arith.constant 0 : i32
    return %c0_i32, %c0_i32_0 : i32, i32
  }
  func.func @transform_8(%arg0: i32) -> (i32, i32) {
    %c0_i32 = arith.constant 0 : i32
    %c0_i32_0 = arith.constant 0 : i32
    %c0_i32_1 = arith.constant 0 : i32
    return %c0_i32, %c0_i32_0 : i32, i32
  }
  func.func @transform_9(%arg0: i32) -> (i32, i32) {
    %c0_i32 = arith.constant 0 : i32
    %c0_i32_0 = arith.constant 0 : i32
    %c0_i32_1 = arith.constant 0 : i32
    return %c0_i32, %c0_i32_0 : i32, i32
  }
  func.func @transform_10(%arg0: i32) -> (i32, i32) {
    %c0_i32 = arith.constant 0 : i32
    %c0_i32_0 = arith.constant 0 : i32
    %c0_i32_1 = arith.constant 0 : i32
    return %c0_i32, %c0_i32_0 : i32, i32
  }
  func.func @transform_11(%arg0: i32) -> (i32, i32) {
    %c0_i32 = arith.constant 0 : i32
    %c0_i32_0 = arith.constant 0 : i32
    %c0_i32_1 = arith.constant 0 : i32
    return %c0_i32, %c0_i32_0 : i32, i32
  }
  func.func @transform_12(%arg0: i32) -> (i32, i32) {
    %c0_i32 = arith.constant 0 : i32
    %c0_i32_0 = arith.constant 0 : i32
    %c0_i32_1 = arith.constant 0 : i32
    return %c0_i32, %c0_i32_0 : i32, i32
  }
  func.func @transform_13(%arg0: i32) -> (i32, i32, i32) {
    %c0_i32 = arith.constant 0 : i32
    %c0_i32_0 = arith.constant 0 : i32
    %c0_i32_1 = arith.constant 0 : i32
    return %arg0, %c0_i32, %c0_i32_0 : i32, i32, i32
  }
}

</mosaic_0001>

<bundles_post_ra>
// kernel: tpu_custom_call.1
= control target key start
LH: loop header
LB: loop body
LE: loop exit
PB: predicated region body
PF: predicated region fallthrough
CT: control target
= control target key end

     0   :  { %18 = vsyncpa [#allocation3], 0  ;;  %s1870_s0 = inlined_call_operand.hbm [shape: f32[2,8,32], index: 0, kind: input, shape index: {}]   ;;  %s1871_s1 = inlined_call_operand.hbm [shape: f32[2,8,32], index: 1, kind: input, shape index: {}]   ;;  %s1872_s2 = inlined_call_operand.hbm [shape: f32[2,8,32], index: 2, kind: input, shape index: {}]   ;;  %s1873_s3 = inlined_call_operand.hbm [shape: f32[32,32], index: 3, kind: input, shape index: {}]   ;;  %s1874_s4 = inlined_call_operand.vmem [shape: f32[1,32], index: 4, kind: input, shape index: {}]   ;;  %s1875_s5 = inlined_call_operand.hbm [shape: f32[32,32], index: 5, kind: input, shape index: {}]   ;;  %s1876_s6 = inlined_call_operand.vmem [shape: f32[1,32], index: 6, kind: input, shape index: {}]   ;;  %s1877_s7 = inlined_call_operand.hbm [shape: f32[32,32], index: 7, kind: input, shape index: {}]   ;;  %s1878_s8 = inlined_call_operand.vmem [shape: f32[1,32], index: 8, kind: input, shape index: {}]   ;;  %s1879_s9 = inlined_call_operand.hbm [shape: f32[32,32], index: 9, kind: input, shape index: {}]   ;;  %s1880_s10 = inlined_call_operand.vmem [shape: f32[1,32], index: 10, kind: input, shape index: {}]   ;;  %s1881_s11 = inlined_call_operand.hbm [shape: f32[32,32], index: 11, kind: input, shape index: {}]   ;;  %s1882_s12 = inlined_call_operand.vmem [shape: f32[1,32], index: 12, kind: input, shape index: {}]   ;;  %s1883_s13 = inlined_call_operand.hbm [shape: f32[2,8,32], index: 13, kind: output, shape index: {}]  }
   0x1   :  { %19 = vsyncpa [#allocation6], 0 }
   0x2   :  { %20 = vsyncpa [#allocation9], 0 }
   0x3   :  { %21 = vsyncpa [#allocation12], 0 }
   0x4   :  { %22 = vsyncpa [#allocation15], 0 }
   0x5   :  { %23 = vsyncpa [#allocation4], 0  ;;  %s1662_s25 = smov [#allocation5]   ;;  %s1663_s27 = smov [#allocation8]  }
   0x6   :  { %s41_s26 = sshll.u32 %s1662_s25, 4  ;;  %s65_s28 = sshll.u32 %s1663_s27, 4  ;;  %s42_s26 = int_to_ptr.vmem [resolvable:$true] %s41_s26  ;;  %s66_s28 = int_to_ptr.vmem [resolvable:$true] %s65_s28 }
   0x7   :  { %s1478_s29 = scalar_lea.vmem %s42_s26, 256  ;;  %p1483_p1 = scmp.lt.s32.totalorder %s42_s26, %s42_s26 }
   0x8   :  { %p1479_p0 = scmp.ne.s32.totalorder %s42_s26, %s1478_s29  ;;  %p1484_p2 = scmp.lt.s32.totalorder %s1478_s29, %s1478_s29 }
   0xa   :  { %p1485_p3 = por %p1484_p2, %p1483_p1 }
   0xc   :  { %p1486_p4 = pnand %p1485_p3, %p1479_p0 }
   0xe   :  { %1489 = shalt.err (!%p1486_p4)
}
   0xf   :  { %s1664_s30 = smov 128   ;;  %s1665_s14 = smov 8  }
  0x10   :  { %47 = dma.hbm_to_vmem [thread:$0]  %s1871_s1, 256, %s42_s26, [#allocation6], %s1664_s30, %s1664_s30, %s1665_s14  }
  0x11   :  { %s1498_s17 = scalar_lea.vmem %s66_s28, 512  ;;  %p1503_p6 = scmp.lt.s32.totalorder %s66_s28, %s66_s28 }
  0x12   :  { %p1499_p5 = scmp.ne.s32.totalorder %s66_s28, %s1498_s17  ;;  %p1504_p7 = scmp.lt.s32.totalorder %s1498_s17, %s1498_s17 }
  0x14   :  { %p1505_p8 = por %p1504_p7, %p1503_p6 }
  0x16   :  { %p1506_p9 = pnand %p1505_p8, %p1499_p5 }
  0x18   :  { %1509 = shalt.err (!%p1506_p9)
}
  0x19   :  { %71 = dma.hbm_to_vmem [thread:$0]  %s1873_s3, 512, %s66_s28, [#allocation9], %s1664_s30, %s1664_s30, %s1665_s14  }
  0x1a   :  { %s1666_s20 = smov [#allocation11]   ;;  %s1667_s22 = smov [#allocation2]  }
  0x1b   :  { %s93_s21 = sshll.u32 %s1666_s20, 4  ;;  %s29_s23 = sshll.u32 %s1667_s22, 4  ;;  %s94_s21 = int_to_ptr.vmem [resolvable:$true] %s93_s21  ;;  %s30_s23 = int_to_ptr.vmem [resolvable:$true] %s29_s23 }
  0x1c   :  { %s1518_s1 = scalar_lea.vmem %s94_s21, 512  ;;  %p1523_p11 = scmp.lt.s32.totalorder %s94_s21, %s94_s21 }
  0x1d   :  { %p1519_p10 = scmp.ne.s32.totalorder %s94_s21, %s1518_s1  ;;  %p1524_p12 = scmp.lt.s32.totalorder %s1518_s1, %s1518_s1 }
  0x1f   :  { %p1525_p13 = por %p1524_p12, %p1523_p11 }
  0x21   :  { %p1526_p0 = pnand %p1525_p13, %p1519_p10 }
  0x23   :  { %1529 = shalt.err (!%p1526_p0)
}
  0x24   :  { %99 = dma.hbm_to_vmem [thread:$0]  %s1877_s7, 512, %s94_s21, [#allocation12], %s1664_s30, %s1664_s30, %s1665_s14  }
  0x25   :  { %s1538_s3 = scalar_lea.vmem %s30_s23, 256  ;;  %p1543_p2 = scmp.lt.s32.totalorder %s30_s23, %s30_s23 }
  0x26   :  { %p1539_p1 = scmp.ne.s32.totalorder %s30_s23, %s1538_s3  ;;  %p1544_p3 = scmp.lt.s32.totalorder %s1538_s3, %s1538_s3 }
  0x28   :  { %p1545_p4 = por %p1544_p3, %p1543_p2 }
  0x2a   :  { %p1546_p5 = pnand %p1545_p4, %p1539_p1 }
  0x2c   :  { %1549 = shalt.err (!%p1546_p5)
}
  0x2d   :  { %35 = dma.hbm_to_vmem [thread:$0]  %s1870_s0, 256, %s30_s23, [#allocation3], %s1664_s30, %s1664_s30, %s1665_s14  }
  0x2e   :  { %s1668_s28 = smov [#allocation7]   ;;  %s1669_s15 = smov [#allocation10]  }
  0x2f   :  { %s53_s29 = sshll.u32 %s1668_s28, 4  ;;  %s79_s16 = sshll.u32 %s1669_s15, 4  ;;  %s54_s29 = int_to_ptr.vmem [resolvable:$true] %s53_s29  ;;  %s80_s16 = int_to_ptr.vmem [resolvable:$true] %s79_s16 }
  0x30   :  { %s1558_s7 = scalar_lea.vmem %s54_s29, 256  ;;  %p1563_p7 = scmp.lt.s32.totalorder %s54_s29, %s54_s29 }
  0x31   :  { %p1559_p6 = scmp.ne.s32.totalorder %s54_s29, %s1558_s7  ;;  %p1564_p8 = scmp.lt.s32.totalorder %s1558_s7, %s1558_s7 }
  0x33   :  { %p1565_p9 = por %p1564_p8, %p1563_p7 }
  0x35   :  { %p1566_p10 = pnand %p1565_p9, %p1559_p6 }
  0x37   :  { %1569 = shalt.err (!%p1566_p10)
}
  0x38   :  { %59 = dma.hbm_to_vmem [thread:$0]  %s1872_s2, 256, %s54_s29, [#allocation6], %s1664_s30, %s1664_s30, %s1665_s14  }
  0x39   :  { %s1578_s0 = scalar_lea.vmem %s80_s16, 512  ;;  %p1583_p12 = scmp.lt.s32.totalorder %s80_s16, %s80_s16 }
  0x3a   :  { %p1579_p11 = scmp.ne.s32.totalorder %s80_s16, %s1578_s0  ;;  %p1584_p13 = scmp.lt.s32.totalorder %s1578_s0, %s1578_s0 }
  0x3c   :  { %p1585_p0 = por %p1584_p13, %p1583_p12 }
  0x3e   :  { %p1586_p1 = pnand %p1585_p0, %p1579_p11 }
  0x40   :  { %1589 = shalt.err (!%p1586_p1)
}
  0x41   :  { %85 = dma.hbm_to_vmem [thread:$0]  %s1875_s5, 512, %s80_s16, [#allocation9], %s1664_s30, %s1664_s30, %s1665_s14  }
  0x42   :  { %s1670_s21 = smov [#allocation13]   ;;  %s1671_s23 = smov [#allocation14]  }
  0x43   :  { %s107_s22 = sshll.u32 %s1670_s21, 4  ;;  %s121_s1 = sshll.u32 %s1671_s23, 4  ;;  %s108_s22 = int_to_ptr.vmem [resolvable:$true] %s107_s22  ;;  %s122_s1 = int_to_ptr.vmem [resolvable:$true] %s121_s1 }
  0x44   :  { %s1598_s2 = scalar_lea.vmem %s108_s22, 512  ;;  %p1603_p3 = scmp.lt.s32.totalorder %s108_s22, %s108_s22 }
  0x45   :  { %p1599_p2 = scmp.ne.s32.totalorder %s108_s22, %s1598_s2  ;;  %p1604_p4 = scmp.lt.s32.totalorder %s1598_s2, %s1598_s2 }
  0x47   :  { %p1605_p5 = por %p1604_p4, %p1603_p3 }
  0x49   :  { %p1606_p6 = pnand %p1605_p5, %p1599_p2 }
  0x4b   :  { %1609 = shalt.err (!%p1606_p6)
}
  0x4c   :  { %113 = dma.hbm_to_vmem [thread:$0]  %s1879_s9, 512, %s108_s22, [#allocation12], %s1664_s30, %s1664_s30, %s1665_s14  }
  0x4d   :  { %s1618_s5 = scalar_lea.vmem %s122_s1, 512  ;;  %p1623_p8 = scmp.lt.s32.totalorder %s122_s1, %s122_s1 }
  0x4e   :  { %p1619_p7 = scmp.ne.s32.totalorder %s122_s1, %s1618_s5  ;;  %p1624_p9 = scmp.lt.s32.totalorder %s1618_s5, %s1618_s5 }
  0x50   :  { %p1625_p10 = por %p1624_p9, %p1623_p8 }
  0x52   :  { %p1626_p11 = pnand %p1625_p10, %p1619_p7 }
  0x54   :  { %1629 = shalt.err (!%p1626_p11)
}
  0x55   :  { %127 = dma.hbm_to_vmem [thread:$0]  %s1881_s11, 512, %s122_s1, [#allocation15], %s1664_s30, %s1664_s30, %s1665_s14  }
  0x56   :  { %1650 = dma.done.wait [#allocation3], 256  }
  0x57   :  { %1651 = vsyncadd [#allocation3], 4294967040 }
  0x58   :  { %1652 = dma.done.wait [#allocation6], 512  }
  0x59   :  { %1653 = vsyncadd [#allocation6], 4294966784 }
  0x5a   :  { %1654 = dma.done.wait [#allocation9], 1024  }
  0x5b   :  { %1655 = vsyncadd [#allocation9], 4294966272 }
  0x5c   :  { %1656 = dma.done.wait [#allocation12], 1024  }
  0x5d   :  { %1657 = vsyncadd [#allocation12], 4294966272 }
  0x5e   :  { %1658 = dma.done.wait [#allocation15], 512  }
  0x5f   :  { %1659 = vsyncadd [#allocation15], 4294966784  ;;  %v260_v0 = vld [vmem:[#allocation10 + $0x18] sm:$0xff]  ;;  %v259_v1 = vld [vmem:[#allocation10 + $0x10] sm:$0xff]  ;;  %vm175_vm0 = vcmask 261120   ;;  %v1672_v30 = vmov 0.0  }
  0x60   :  { %1361 = vmatprep.subr.mxu1 %v260_v0  ;;  %v258_v2 = vld [vmem:[#allocation10 + $0x8] sm:$0xff]  ;;  %v154_v3 = vld [vmem:[#allocation2] sm:$0xff]  ;;  %v167_v5 = vld [vmem:[#allocation8 + $0x18] sm:$0xff]  ;;  %vm1673_vm1 = vmmov 0   ;;  %vm917_vm2 = vcmask 64512  }
  0x61   :  { %1362 = vmatpush3.msra.mxu1 %v260_v0  ;;  %v158_v4 = vld [vmem:[#allocation7] sm:$0xff]  ;;  %v155_v6 = vld [vmem:[#allocation2 + $0x8] sm:$0xff]  ;;  %1350 = vmatprep.subr.mxu0 %v167_v5  ;;  %v257_v9 = vld [vmem:[#allocation10] sm:$0xff] }
  0x62   :  { %1363 = vmatprep.subr.mxu1 %v259_v1  ;;  %v160_v7 = vadd.f32 %v158_v4, %v154_v3  ;;  %v159_v8 = vld [vmem:[#allocation7 + $0x8] sm:$0xff]  ;;  %1351 = vmatpush3.msra.mxu0 %v167_v5  ;;  %v166_v10 = vld [vmem:[#allocation8 + $0x10] sm:$0xff]  ;;  %v165_v12 = vld [vmem:[#allocation8 + $0x8] sm:$0xff] }
  0x63   :  { %1364 = vmatpush3.msra.mxu1 %v259_v1  ;;  %v161_v11 = vadd.f32 %v159_v8, %v155_v6  ;;  %v438_v13 = vld [vmem:[#allocation13 + $0x18] sm:$0xff]  ;;  %1352 = vmatprep.subr.mxu0 %v166_v10  ;;  %v156_v14 = vld [vmem:[#allocation5] sm:$0xff]  ;;  %v437_v15 = vld [vmem:[#allocation13 + $0x10] sm:$0xff] }
  0x64   :  { %1365 = vmatprep.subr.mxu1 %v258_v2  ;;  %1369 = vmatprep.mubr.msk.f32.mxu1 %vm175_vm0, %v160_v7  ;;  %v164_v16 = vld [vmem:[#allocation8] sm:$0xff]  ;;  %v162_v17 = vadd.f32 %v158_v4, %v156_v14  ;;  %v157_v18 = vld [vmem:[#allocation5 + $0x8] sm:$0xff]  ;;  %v346_v22 = vld [vmem:[#allocation11 + $0x18] sm:$0xff] }
  0x65   :  { %1366 = vmatpush3.msra.mxu1 %v258_v2  ;;  %1353 = vmatpush3.msra.mxu0 %v166_v10  ;;  %v436_v19 = vld [vmem:[#allocation13 + $0x8] sm:$0xff]  ;;  %v435_v20 = vld [vmem:[#allocation13] sm:$0xff]  ;;  %v163_v21 = vadd.f32 %v159_v8, %v157_v18  ;;  %v345_v23 = vld [vmem:[#allocation11 + $0x10] sm:$0xff] }
  0x66   :  { %1367 = vmatprep.subr.mxu1 %v257_v9  ;;  %1354 = vmatprep.subr.mxu0 %v165_v12  ;;  %v344_v24 = vld [vmem:[#allocation11 + $0x8] sm:$0xff]  ;;  %v343_v25 = vld [vmem:[#allocation11] sm:$0xff]  ;;  %v530_v26 = vld [vmem:[#allocation14 + $0x18] sm:$0xff] }
  0x67   :  { %1368 = vmatpush3.msra.mxu1 %v257_v9  ;;  %1355 = vmatpush3.msra.mxu0 %v165_v12  ;;  %v529_v27 = vld [vmem:[#allocation14 + $0x10] sm:$0xff]  ;;  %v528_v28 = vld [vmem:[#allocation14 + $0x8] sm:$0xff]  ;;  %v527_v29 = vld [vmem:[#allocation14] sm:$0xff] }
  0x68   :  { %1370 = vmatmul.mubr.msk.f32.vlgmr.msra.gmra.mxu1 %vm175_vm0, %v161_v11  ;;  %1383 = vmatprep.subr.mxu1 %v438_v13  ;;  %v1280_v32 = vld [vmem:[%s1876_s6] ss:$0 sm:$0xff] }
  0x69   :  { %1384 = vmatpush3.msra.mxu1 %v438_v13  ;;  %1356 = vmatprep.subr.mxu0 %v164_v16  ;;  %v1277_v36 = vld [vmem:[%s1874_s4] ss:$0 sm:$0xff] }
  0x6a   :  { %1385 = vmatprep.subr.mxu1 %v437_v15  ;;  %1357 = vmatpush3.msra.mxu0 %v164_v16  ;;  %v1286_v40 = vld [vmem:[%s1880_s10] ss:$0 sm:$0xff] }
  0x6b   :  { %1386 = vmatpush3.msra.mxu1 %v437_v15  ;;  %1358 = vmatprep.mubr.msk.f32.mxu0 %vm175_vm0, %v160_v7  ;;  %v1283_v45 = vld [vmem:[%s1878_s8] ss:$0 sm:$0xff] }
  0x6c   :  { %1387 = vmatprep.subr.mxu1 %v436_v19  ;;  %1391 = vmatprep.mubr.msk.f32.mxu1 %vm175_vm0, %v162_v17  ;;  %v1289_v15 = vld [vmem:[%s1882_s12] ss:$0 sm:$0xff]  ;;  %s1674_s12 = smov [#allocation16]  }
  0x6d   :  { %1388 = vmatpush3.msra.mxu1 %v436_v19  ;;  %1359 = vmatmul.mubr.msk.f32.vlgmr.msra.gmra.mxu0 %vm175_vm0, %v161_v11  ;;  %s1261_s16 = sshll.u32 %s1674_s12, 4  ;;  %s1262_s16 = int_to_ptr.vmem [resolvable:$true] %s1261_s16 }
  0x6e   :  { %1389 = vmatprep.subr.mxu1 %v435_v20  ;;  %1372 = vmatprep.subr.mxu0 %v346_v22  ;;  %s1630_s7 = scalar_lea.vmem %s1262_s16, 256  ;;  %p1635_p13 = scmp.lt.s32.totalorder %s1262_s16, %s1262_s16 }
  0x6f   :  { %1390 = vmatpush3.msra.mxu1 %v435_v20  ;;  %1373 = vmatpush3.msra.mxu0 %v346_v22  ;;  %p1631_p12 = scmp.ne.s32.totalorder %s1262_s16, %s1630_s7  ;;  %p1636_p0 = scmp.lt.s32.totalorder %s1630_s7, %s1630_s7 }
  0x70   :  { %1392 = vmatmul.mubr.msk.f32.vlgmr.msra.gmra.mxu1 %vm175_vm0, %v163_v21  ;;  %1374 = vmatprep.subr.mxu0 %v345_v23 }
  0x71   :  { %1380 = vmatprep.mubr.msk.f32.mxu0 %vm175_vm0, %v154_v3  ;;  %1375 = vmatpush3.msra.mxu0 %v345_v23  ;;  %p1637_p1 = por %p1636_p0, %p1635_p13 }
  0x72   :  { %1376 = vmatprep.subr.mxu0 %v344_v24  ;;  %1405 = vmatprep.subr.mxu1 %v1672_v30 }
  0x73   :  { %1377 = vmatpush3.msra.mxu0 %v344_v24  ;;  %1407 = vmatprep.mubr.msk.f32.mxu1 %vm1673_vm1, %v1672_v30  ;;  %p1638_p2 = pnand %p1637_p1, %p1631_p12 }
  0x74   :  { %1378 = vmatprep.subr.mxu0 %v343_v25 }
  0x75   :  { %1379 = vmatpush3.msra.mxu0 %v343_v25 }
  0x76   :  { %1394 = vmatprep.subr.mxu0 %v530_v26  ;;  %1381 = vmatmul.mubr.msk.f32.vlgmr.msra.gmra.mxu0 %vm175_vm0, %v155_v6 }
  0x77   :  { %1395 = vmatpush3.msra.mxu0 %v530_v26  ;;  %1402 = vmatprep.mubr.msk.f32.mxu0 %vm175_vm0, %v156_v14 }
  0x78   :  { %1396 = vmatprep.subr.mxu0 %v529_v27 }
  0x79   :  { %1397 = vmatpush3.msra.mxu0 %v529_v27 }
  0x7a   :  { %1398 = vmatprep.subr.mxu0 %v528_v28 }
  0x7b   :  { %1399 = vmatpush3.msra.mxu0 %v528_v28 }
  0x7c   :  { %1400 = vmatprep.subr.mxu0 %v527_v29 }
  0x7d   :  { %1401 = vmatpush3.msra.mxu0 %v527_v29 }
  0x7e   :  { %1415 = vmatprep.subr.mxu0 %v1672_v30  ;;  %1403 = vmatmul.mubr.msk.f32.vlgmr.msra.gmra.mxu0 %vm175_vm0, %v157_v18 }
  0x7f   :  { %1417 = vmatprep.mubr.msk.f32.mxu0 %vm1673_vm1, %v1672_v30 }
 0x128   :  { %v1371_v31 = vpop.f32.mrf.mxu1 }
 0x129   :  { %v340_v49 = vadd.f32 %v1371_v31, %v1280_v32 }
 0x12a   :  { %v334_v33 = vpop.f32.mrf.mxu1 }
 0x12b   :  { %v335_v34 = vadd.f32 %v1280_v32, %v334_v33 }
 0x12d   :  { %1416 = vmatpush3.xpose.msk.msra.mxu0 %vm175_vm0, %v335_v34  ;;  %v1360_v35 = vpop.f32.mrf.mxu0 }
 0x12e   :  { %1425 = vmatprep.subr.mxu0 %v1672_v30  ;;  %v254_v47 = vadd.f32 %v1360_v35, %v1277_v36 }
 0x12f   :  { %v248_v38 = vpop.f32.mrf.mxu0 }
 0x130   :  { %v1393_v37 = vpop.f32.mrf.mxu1  ;;  %v249_v39 = vadd.f32 %v1277_v36, %v248_v38 }
 0x131   :  { %v524_v43 = vadd.f32 %v1393_v37, %v1286_v40 }
 0x132   :  { %v518_v41 = vpop.f32.mrf.mxu1  ;;  %1418 = vmatmul.mubr.msk.f32.vlgmr.msra.gmra.mxu0 %vm175_vm0, %v249_v39 }
 0x133   :  { %v519_v42 = vadd.f32 %v1286_v40, %v518_v41  ;;  %1427 = vmatprep.mubr.msk.f32.mxu0 %vm1673_vm1, %v1672_v30 }
 0x135   :  { %1406 = vmatpush3.xpose.msk.msra.mxu1 %vm175_vm0, %v519_v42 }
 0x136   :  { %1410 = vmatprep.subr.mxu1 %v1672_v30  ;;  %v1382_v44 = vpop.f32.mrf.mxu0 }
 0x137   :  { %v432_v50 = vadd.f32 %v1382_v44, %v1283_v45 }
 0x138   :  { %1408 = vmatmul.mubr.msk.f32.vlgmr.msra.gmra.mxu1 %vm175_vm0, %v249_v39  ;;  %v426_v46 = vpop.f32.mrf.mxu0 }
 0x139   :  { %1411 = vmatpush3.xpose.msk.msra.mxu1 %vm175_vm0, %v524_v43  ;;  %1412 = vmatprep.mubr.msk.f32.mxu1 %vm1673_vm1, %v1672_v30  ;;  %v427_v48 = vadd.f32 %v1283_v45, %v426_v46 }
 0x13a   :  { %1420 = vmatprep.subr.mxu1 %v1672_v30 }
 0x13b   :  { %1426 = vmatpush3.msra.mxu0 %v427_v48 }
 0x13c   :  { %1413 = vmatmul.mubr.msk.f32.vlgmr.msra.gmra.mxu1 %vm175_vm0, %v254_v47  ;;  %1435 = vmatprep.subr.mxu0 %v1672_v30 }
 0x13d   :  { %1421 = vmatpush3.xpose.msk.msra.mxu1 %vm175_vm0, %v340_v49  ;;  %1422 = vmatprep.mubr.msk.f32.mxu1 %vm1673_vm1, %v1672_v30 }
 0x13e   :  { %1430 = vmatprep.subr.mxu1 %v1672_v30  ;;  %v1404_v51 = vpop.f32.mrf.mxu0 }
 0x13f   :  { %v616_v23 = vadd.f32 %v1404_v51, %v1289_v15 }
 0x140   :  { %1423 = vmatmul.mubr.msk.f32.vlgmr.msra.gmra.mxu1 %vm175_vm0, %v254_v47  ;;  %v610_v52 = vpop.f32.mrf.mxu0 }
 0x141   :  { %1431 = vmatpush3.msra.mxu1 %v432_v50  ;;  %1432 = vmatprep.mubr.msk.f32.mxu1 %vm1673_vm1, %v1672_v30  ;;  %v611_v18 = vadd.f32 %v1289_v15, %v610_v52 }
 0x142   :  { %1440 = vmatprep.subr.mxu1 %v1672_v30 }
 0x1f2   :  { %v840_v53 = vpop.f32.mrf.mxu0 }
 0x1f3   :  { %v924_v54 = vsel %vm917_vm2, %v840_v53, -inf }
 0x1f4   :  { %v1419_v55 = vpop.f32.mrf.mxu0  ;;  %925 = vmax.xlane.f32.xlu1 %v924_v54 }
 0x1f8   :  { %v691_v56 = vpop.f32.mrf.mxu1 }
 0x1f9   :  { %v918_v57 = vsel %vm917_vm2, %v691_v56, -inf }
 0x1fa   :  { %919 = vmax.xlane.f32.xlu0 %v918_v57  ;;  %v1409_v58 = vpop.f32.mrf.mxu1 }
 0x1fc   :  { %v767_v59 = vpop.f32.mrf.mxu1 }
 0x1fd   :  { %v921_v60 = vsel %vm917_vm2, %v767_v59, -inf }
 0x1fe   :  { %922 = vmax.xlane.f32.xlu0 %v921_v60  ;;  %v1414_v61 = vpop.f32.mrf.mxu1 }
 0x200   :  { %v913_v62 = vpop.f32.mrf.mxu1 }
 0x201   :  { %v927_v63 = vsel %vm917_vm2, %v913_v62, -inf }
 0x202   :  { %928 = vmax.xlane.f32.xlu1 %v927_v63  ;;  %v1424_v0 = vpop.f32.mrf.mxu1 }
 0x27d   :  { %v926_v1 = vpop.xlane.xlu1 %925 }
 0x283   :  { %v920_v2 = vpop.xlane.xlu0 %919 }
 0x284   :  { %v930_v3 = vmax.f32 %v920_v2, %v926_v1 }
 0x286   :  { %v932_v4 = vsub.f32 %v691_v56, %v930_v3  ;;  %v938_v5 = vsub.f32 %v840_v53, %v930_v3 }
 0x287   :  { %v923_v8 = vpop.xlane.xlu0 %922 }
 0x288   :  { %v934_v6 = vmul.f32 1.442695, %v932_v4  ;;  %v940_v7 = vmul.f32 1.442695, %v938_v5 }
 0x28a   :  { %1458 = vpow2.f32 %v934_v6 }
 0x28b   :  { %1460 = vpow2.f32 %v940_v7  ;;  %v929_v9 = vpop.xlane.xlu1 %928 }
 0x28c   :  { %v931_v10 = vmax.f32 %v923_v8, %v929_v9 }
 0x28e   :  { %v933_v11 = vsub.f32 %v767_v59, %v931_v10  ;;  %v939_v12 = vsub.f32 %v913_v62, %v931_v10 }
 0x290   :  { %v936_v13 = vmul.f32 1.442695, %v933_v11  ;;  %v942_v14 = vmul.f32 1.442695, %v939_v12 }
 0x292   :  { %1462 = vpow2.f32 %v936_v13 }
 0x293   :  { %1464 = vpow2.f32 %v942_v14 }
 0x297   :  { %v1459_v16 = vpop.eup %1458 }
 0x298   :  { %v1461_v17 = vpop.eup %1460  ;;  %v944_v19 = vsel %vm917_vm2, %v1459_v16, 0.0 }
 0x299   :  { %1428 = vmatmul.mubr.msk.f32.vlgmr.msra.gmra.mxu0 %vm917_vm2, %v1461_v17  ;;  %945 = vadd.xlane.f32.xlu0 %v944_v19  ;;  %v950_v20 = vsel %vm917_vm2, %v1461_v17, 0.0 }
 0x29a   :  { %1436 = vmatpush3.msra.mxu0 %v611_v18  ;;  %1437 = vmatprep.mubr.msk.f32.mxu0 %vm1673_vm1, %v1672_v30 }
 0x29d   :  { %1438 = vmatmul.mubr.msk.f32.vlgmr.msra.gmra.mxu0 %vm917_vm2, %v1459_v16  ;;  %951 = vadd.xlane.f32.xlu0 %v950_v20 }
 0x29f   :  { %v1463_v21 = vpop.eup %1462 }
 0x2a0   :  { %v1465_v22 = vpop.eup %1464  ;;  %v947_v24 = vsel %vm917_vm2, %v1463_v21, 0.0 }
 0x2a1   :  { %1433 = vmatmul.mubr.msk.f32.vlgmr.msra.gmra.mxu1 %vm917_vm2, %v1465_v22  ;;  %948 = vadd.xlane.f32.xlu1 %v947_v24  ;;  %v953_v25 = vsel %vm917_vm2, %v1465_v22, 0.0 }
 0x2a2   :  { %1441 = vmatpush3.msra.mxu1 %v616_v23  ;;  %1442 = vmatprep.mubr.msk.f32.mxu1 %vm1673_vm1, %v1672_v30 }
 0x2a5   :  { %1443 = vmatmul.mubr.msk.f32.vlgmr.msra.gmra.mxu1 %vm917_vm2, %v1463_v21  ;;  %954 = vadd.xlane.f32.xlu1 %v953_v25 }
 0x322   :  { %v946_v26 = vpop.xlane.xlu0 %945 }
 0x326   :  { %v952_v27 = vpop.xlane.xlu0 %951 }
 0x327   :  { %v956_v29 = vadd.f32 %v952_v27, %v946_v26 }
 0x329   :  { %1466 = vrcp.f32 %v956_v29 }
 0x32a   :  { %v949_v28 = vpop.xlane.xlu1 %948 }
 0x32e   :  { %v955_v31 = vpop.xlane.xlu1 %954 }
 0x32f   :  { %v957_v32 = vadd.f32 %v955_v31, %v949_v28 }
 0x331   :  { %1468 = vrcp.f32 %v957_v32 }
 0x336   :  { %v1467_v37 = vpop.eup %1466 }
 0x33e   :  { %v1469_v43 = vpop.eup %1468 }
 0x359   :  { %v1029_v33 = vpop.f32.mrf.mxu0 }
 0x35b   :  { %v1429_v34 = vpop.f32.mrf.mxu0 }
 0x35d   :  { %v1175_v35 = vpop.f32.mrf.mxu0 }
 0x35e   :  { %v1176_v36 = vadd.f32 %v1175_v35, %v1029_v33 }
 0x35f   :  { %v1439_v38 = vpop.f32.mrf.mxu0 }
 0x360   :  { %v1252_v30 = vmul.f32 %v1467_v37, %v1176_v36 }
 0x361   :  { %v1102_v39 = vpop.f32.mrf.mxu1 }
 0x362   :  { %1254 = vst.msk [vmem:[#allocation16] sm:$0xff] %vm175_vm0, %v1252_v30 }
 0x363   :  { %v1434_v40 = vpop.f32.mrf.mxu1 }
 0x365   :  { %v1248_v41 = vpop.f32.mrf.mxu1 }
 0x366   :  { %v1249_v42 = vadd.f32 %v1248_v41, %v1102_v39 }
 0x367   :  { %v1444_v44 = vpop.f32.mrf.mxu1 }
 0x368   :  { %v1253_v45 = vmul.f32 %v1469_v43, %v1249_v42 }
 0x36a   :  { %1255 = vst.msk [vmem:[#allocation16 + $0x8] sm:$0xff] %vm175_vm0, %v1253_v45 }
 0x36b   :  { %1641 = shalt.err (!%p1638_p2)
}
 0x36c   :  { %1267 = dma.vmem_to_hbm [thread:$0]  %s1262_s16, 256, %s1883_s13, [#allocation4], %s1664_s30, %s1664_s30, %s1665_s14  }
 0x36d   :  { %1660 = dma.done.wait [#allocation4], 256  }
 0x36e   :  { %1661 = vsyncadd [#allocation4], 4294967040 }
 0x36f   :  { %1271 = vsyncpa [#allocation3], 1 }
 0x370   :  { %1272 = vsyncpa [#allocation6], 1 }
 0x371   :  { %1273 = vsyncpa [#allocation9], 1 }
 0x372   :  { %1274 = vsyncpa [#allocation12], 1 }
 0x373   :  { %1275 = vsyncpa [#allocation15], 1 }
 0x374   :  { %1276 = vsyncpa [#allocation4], 1 }

</bundles_post_ra>
